<compile_context>
chip_gen: v6e
topology: v6e:2x2x1
jax: 0.10.0
libtpu: 0.0.40
codegen_flags: <defaults>
</compile_context>

<pallas_src>
import functools

import jax
import jax.numpy as jnp
from jax.experimental import pallas as pl
from jax.experimental.pallas import tpu as pltpu


_LANE = 128
_ROW_TILE_CAP = 512                      # rows; ~roofline already, keeps >=4 steps for big B
_TILE_VMEM_BUDGET = 12 * 1024 * 1024     # per-step tiles + temporaries + resident weights
_VMEM_LIMIT_BYTES = 32 * 1024 * 1024     # safe on v7x's 64 MiB physical VMEM


def _round_up(a: int, m: int) -> int:
    return ((a + m - 1) // m) * m


def _tensorcore_count() -> int:
    """Best-effort TensorCore count (v7x has 2 per chip); defaults to 1."""
    try:
        info = pltpu.get_tpu_info()
        for attr in ("num_cores", "tensorcore_count", "num_tensorcores", "cores_per_chip"):
            n = getattr(info, attr, None)
            if isinstance(n, int) and n > 0:
                return n
    except Exception:
        pass
    try:
        dev = jax.devices()[0]
        for attr in ("num_cores", "core_count"):
            n = getattr(dev, attr, None)
            if isinstance(n, int) and n > 0:
                return n
    except Exception:
        pass
    return 1


def _pick_tiling(B: int, sub: int, cap: int, min_steps: int):
    """Pick (row_tile, padded_B). Prefers tiles that divide B exactly."""
    cap = max(sub, (cap // sub) * sub)
    # Ensure >= min_steps pipelined grid steps when the batch is big enough.
    if min_steps > 1 and B >= min_steps * sub:
        cap = min(cap, max(sub, (B // min_steps) // sub * sub))
    if B % sub == 0:
        # Largest multiple of `sub` <= cap that divides B -> no pad, no slice copy.
        t = min(cap, B)
        while t >= sub and B % t:
            t -= sub
        if t >= sub and (t == B or t >= 64):
            return t, B
    # Fallback (awkward factors): pad the batch to a multiple of the tile.
    tile = min(cap, _round_up(B, sub))
    return tile, _round_up(B, tile)


def _cycle_classifier_kernel(x_ref, w_ref, b_ref, xn_ref, logits_ref, *,
                             normalize: bool):
    # x_ref:      (TB, D)     input rows
    # w_ref:      (D, NOUT)   both heads' weights (bf16), concatenated + zero-padded
    # b_ref:      (1, NOUT)   both heads' biases (f32),   concatenated + zero-padded
    # xn_ref:     (TB, D)     normalized embedding (the module's returned `x`)
    # logits_ref: (TB, NOUT)  concatenated logits (head1 | head2 | zero pad)
    xf = x_ref[...].astype(jnp.float32)              # elementwise path in f32 (v5e-safe)
    if normalize:
        ss = jnp.sum(xf * xf, axis=-1, keepdims=True)       # (TB, 1)
        inv_norm = jax.lax.rsqrt(ss + 1e-12)                 # EUP slot; eps guards zero rows
        xf = xf * inv_norm                                   # scale applied in f32
    xn_ref[...] = xf.astype(xn_ref.dtype)

    h = jnp.maximum(xf, 0.0).astype(jnp.bfloat16)            # relu in f32, bf16 MXU operand
    logits = jnp.dot(h, w_ref[...], preferred_element_type=jnp.float32)
    logits = logits + b_ref[...]                             # bias add in f32
    logits_ref[...] = logits.astype(logits_ref.dtype)


def cycle_classifier_forward(x, w1, b1, w2, b2, *, normalize: bool = True):
    """Pallas equivalent of CycleClassifier(network, n_class).forward(x).

    x:  (B, D)                        (network.forward == identity)
    w1: (n_class, D), b1: (n_class,)  output_layer_1 (PyTorch Linear layout)
    w2: (6, D),       b2: (6,)        output_layer_2
    Returns ((logits_1, logits_2), x_embed) matching the PyTorch module.
    """
    B, D = x.shape
    n1 = w1.shape[0]
    n2 = w2.shape[0]
    itemsize = jnp.dtype(x.dtype).itemsize

    # Lane-dense combined head: (D, NOUT) with NOUT a multiple of 128 (min 128).
    nout = _round_up(n1 + n2, _LANE)
    pad_cols = nout - (n1 + n2)
    w_parts = [w1.astype(jnp.bfloat16).T, w2.astype(jnp.bfloat16).T]
    b_parts = [b1.astype(jnp.float32), b2.astype(jnp.float32)]
    if pad_cols:
        w_parts.append(jnp.zeros((D, pad_cols), jnp.bfloat16))
        b_parts.append(jnp.zeros((pad_cols,), jnp.float32))
    w_cat = jnp.concatenate(w_parts, axis=1)                 # one-shot pack (bf16 MXU weights)
    b_cat = jnp.concatenate(b_parts).reshape(1, nout)        # bias kept in f32

    # dtype-aware sublane alignment: 8 rows (f32), 16 (bf16), 32 (int8).
    sub = {4: 8, 2: 16, 1: 32}.get(itemsize, 8)

    # VMEM accounting:
    #   double-buffered pipeline tiles (x in, xn out, logits out)
    per_row = (4 * D + 2 * nout) * itemsize
    #   in-kernel temporaries: xf (f32), h (bf16), f32 logits
    per_row += 4 * D + 2 * D + 4 * nout
    #   resident weights/biases (double-buffered by the pipeline)
    fixed = 2 * (D * nout * 2 + nout * 4)
    rows_budget = max(sub, ((_TILE_VMEM_BUDGET - fixed) // per_row) // sub * sub)
    cap = min(_ROW_TILE_CAP, rows_budget)

    cores = _tensorcore_count()
    min_steps = 2 * cores if cores > 1 else 1                # >=2 steps per TC on v7x
    row_tile, b_pad = _pick_tiling(B, sub, cap, min_steps)

    # Pad only when no clean tiling exists (rare); padded rows are sliced off.
    x_p = x if b_pad == B else jnp.pad(x, ((0, b_pad - B), (0, 0)))

    cost = pl.CostEstimate(
        flops=int(4 * b_pad * D + 2 * b_pad * D * nout),
        transcendentals=int(b_pad),
        bytes_accessed=int(2 * b_pad * D * itemsize + b_pad * nout * itemsize
                           + 2 * D * nout + 4 * nout),
    )

    xn_out, logits_out = pl.pallas_call(
        functools.partial(_cycle_classifier_kernel, normalize=normalize),
        out_shape=(jax.ShapeDtypeStruct((b_pad, D), x.dtype),
                   jax.ShapeDtypeStruct((b_pad, nout), x.dtype)),
        grid_spec=pl.GridSpec(
            grid=(b_pad // row_tile,),
            in_specs=[
                pl.BlockSpec((row_tile, D), lambda i: (i, 0)),     # x rows
                pl.BlockSpec((D, nout), lambda i: (0, 0)),         # weights (resident)
                pl.BlockSpec((1, nout), lambda i: (0, 0)),         # biases (resident)
            ],
            out_specs=[
                pl.BlockSpec((row_tile, D), lambda i: (i, 0)),     # x_embed
                pl.BlockSpec((row_tile, nout), lambda i: (i, 0)),  # logits (lane-dense)
            ],
        ),
        compiler_params=pltpu.CompilerParams(
            dimension_semantics=("parallel",),
            vmem_limit_bytes=_VMEM_LIMIT_BYTES),
        cost_estimate=cost,
    )(x_p, w_cat, b_cat)

    x_embed = xn_out if b_pad == B else xn_out[:B]
    logits_1 = logits_out[:B, :n1]
    logits_2 = logits_out[:B, n1:n1 + n2]
    return (logits_1, logits_2), x_embed


if __name__ == "__main__":
    key = jax.random.PRNGKey(0)
    k1, k2, k3, k4, k5 = jax.random.split(key, 5)

    B, D, n_class = 16, 256, 4          # D = network.output_shape (lane-aligned)
    x = jax.random.normal(k1, (B, D), dtype=jnp.float32)
    lim = 1.0 / (D ** 0.5)              # PyTorch Linear default init range
    w1 = jax.random.uniform(k2, (n_class, D), jnp.float32, -lim, lim)
    b1 = jax.random.uniform(k3, (n_class,), jnp.float32, -lim, lim)
    w2 = jax.random.uniform(k4, (6, D), jnp.float32, -lim, lim)
    b2 = jax.random.uniform(k5, (6,), jnp.float32, -lim, lim)

    (logits_1, logits_2), x_emb = cycle_classifier_forward(x, w1, b1, w2, b2)
    jax.block_until_ready((logits_1, logits_2, x_emb))

    # Pure-JAX reference (same semantics as the PyTorch module).
    xn_ref = x / jnp.linalg.norm(x, axis=-1, keepdims=True)
    h_ref = jnp.maximum(xn_ref, 0.0)
    l1_ref = h_ref @ w1.T + b1
    l2_ref = h_ref @ w2.T + b2

    assert x_emb.shape == (B, D) and x_emb.dtype == x.dtype
    assert logits_1.shape == (B, n_class) and logits_2.shape == (B, 6)
    assert jnp.allclose(x_emb, xn_ref, atol=1e-5, rtol=1e-5), "embed mismatch"
    assert jnp.allclose(logits_1, l1_ref, atol=5e-3, rtol=5e-3), "logits_1 mismatch"
    assert jnp.allclose(logits_2, l2_ref, atol=5e-3, rtol=5e-3), "logits_2 mismatch"

    print("KERNEL_OK")
</pallas_src>

<mosaic_0001>
module attributes {stable_mosaic.version = 11 : i64} {
  func.func @_cycle_classifier_kernel(%arg0: i32, %arg1: memref<16x256xf32, #tpu.memory_space<vmem>>, %arg2: memref<256x128xbf16, #tpu.memory_space<vmem>>, %arg3: memref<1x128xf32, #tpu.memory_space<vmem>>, %arg4: memref<16x256xf32, #tpu.memory_space<vmem>>, %arg5: memref<16x128xf32, #tpu.memory_space<vmem>>) attributes {dimension_semantics = [#tpu.dimension_semantics<parallel>], iteration_bounds = array<i64: 1>, scalar_prefetch = 0 : i64, scratch_operands = 0 : i64, tpu.core_type = #tpu.core_type<tc>, window_params = [{transform_indices = @transform_0, window_bounds = array<i64: 16, 256>}, {pipeline_mode = #tpu.pipeline_mode<synchronous>, transform_indices = @transform_1, window_bounds = array<i64: 256, 128>}, {pipeline_mode = #tpu.pipeline_mode<synchronous>, transform_indices = @transform_2, window_bounds = array<i64: 1, 128>}, {transform_indices = @transform_3, window_bounds = array<i64: 16, 256>}, {transform_indices = @transform_4, window_bounds = array<i64: 16, 128>}]} {
    %c0 = arith.constant 0 : index
    %c0_0 = arith.constant 0 : index
    %0 = vector.load %arg1[%c0, %c0_0] : memref<16x256xf32, #tpu.memory_space<vmem>>, vector<16x256xf32>
    %1 = arith.mulf %0, %0 : vector<16x256xf32>
    %cst = arith.constant dense<0.000000e+00> : vector<16xf32>
    %2 = vector.multi_reduction <add>, %1, %cst [1] : vector<16x256xf32> to vector<16xf32>
    %3 = vector.shape_cast %2 : vector<16xf32> to vector<16x1xf32>
    %cst_1 = arith.constant 9.99999996E-13 : f32
    %4 = vector.broadcast %cst_1 : f32 to vector<16x1xf32>
    %5 = arith.addf %3, %4 : vector<16x1xf32>
    %6 = math.rsqrt %5 : vector<16x1xf32>
    %7 = vector.broadcast %6 : vector<16x1xf32> to vector<16x256xf32>
    %8 = arith.mulf %0, %7 : vector<16x256xf32>
    %c0_2 = arith.constant 0 : index
    %c0_3 = arith.constant 0 : index
    %9 = vector.load %arg4[%c0_2, %c0_3] : memref<16x256xf32, #tpu.memory_space<vmem>>, vector<16x256xf32>
    tpu.vector_store %arg4[%c0_2, %c0_3], %8 {strides = array<i32>} : memref<16x256xf32, #tpu.memory_space<vmem>>, vector<16x256xf32>,
    %cst_4 = arith.constant 0.000000e+00 : f32
    %10 = vector.broadcast %cst_4 : f32 to vector<16x256xf32>
    %11 = arith.maximumf %8, %10 : vector<16x256xf32>
    %12 = arith.truncf %11 : vector<16x256xf32> to vector<16x256xbf16>
    %c0_5 = arith.constant 0 : index
    %c0_6 = arith.constant 0 : index
    %13 = vector.load %arg2[%c0_5, %c0_6] : memref<256x128xbf16, #tpu.memory_space<vmem>>, vector<256x128xbf16>
    %cst_7 = arith.constant dense<0.000000e+00> : vector<16x128xf32>
    %14 = tpu.matmul %12, %13, %cst_7 {dimension_numbers = #tpu.dot_dimension_numbers<[1], [0], [0], [1], [0, 0, 1, 1], [], []>} : vector<16x256xbf16>, vector<256x128xbf16>, vector<16x128xf32> -> vector<16x128xf32>
    %c0_8 = arith.constant 0 : index
    %c0_9 = arith.constant 0 : index
    %15 = vector.load %arg3[%c0_8, %c0_9] : memref<1x128xf32, #tpu.memory_space<vmem>>, vector<1x128xf32>
    %16 = vector.broadcast %15 : vector<1x128xf32> to vector<16x128xf32>
    %17 = arith.addf %14, %16 : vector<16x128xf32>
    %c0_10 = arith.constant 0 : index
    %c0_11 = arith.constant 0 : index
    %18 = vector.load %arg5[%c0_10, %c0_11] : memref<16x128xf32, #tpu.memory_space<vmem>>, vector<16x128xf32>
    tpu.vector_store %arg5[%c0_10, %c0_11], %17 {strides = array<i32>} : memref<16x128xf32, #tpu.memory_space<vmem>>, vector<16x128xf32>,
    return
  }
  func.func @transform_0(%arg0: i32) -> (i32, i32) {
    %c0_i32 = arith.constant 0 : i32
    %c0_i32_0 = arith.constant 0 : i32
    return %arg0, %c0_i32 : i32, i32
  }
  func.func @transform_1(%arg0: i32) -> (i32, i32) {
    %c0_i32 = arith.constant 0 : i32
    %c0_i32_0 = arith.constant 0 : i32
    %c0_i32_1 = arith.constant 0 : i32
    return %c0_i32, %c0_i32_0 : i32, i32
  }
  func.func @transform_2(%arg0: i32) -> (i32, i32) {
    %c0_i32 = arith.constant 0 : i32
    %c0_i32_0 = arith.constant 0 : i32
    %c0_i32_1 = arith.constant 0 : i32
    return %c0_i32, %c0_i32_0 : i32, i32
  }
  func.func @transform_3(%arg0: i32) -> (i32, i32) {
    %c0_i32 = arith.constant 0 : i32
    %c0_i32_0 = arith.constant 0 : i32
    return %arg0, %c0_i32 : i32, i32
  }
  func.func @transform_4(%arg0: i32) -> (i32, i32) {
    %c0_i32 = arith.constant 0 : i32
    %c0_i32_0 = arith.constant 0 : i32
    return %arg0, %c0_i32 : i32, i32
  }
}

</mosaic_0001>

<bundles_post_ra>
// kernel: tpu_custom_call.1
= control target key start
LH: loop header
LB: loop body
LE: loop exit
PB: predicated region body
PF: predicated region fallthrough
CT: control target
= control target key end

     0   :  { %10 = vsyncpa [#allocation3], 0  ;;  %s504_s0 = inlined_call_operand.hbm [shape: f32[16,256], index: 0, kind: input, shape index: {}]   ;;  %s505_s1 = inlined_call_operand.hbm [shape: bf16[256,128], index: 1, kind: input, shape index: {}]   ;;  %s506_s2 = inlined_call_operand.vmem [shape: f32[1,128], index: 2, kind: input, shape index: {}]   ;;  %s507_s3 = inlined_call_operand.hbm [shape: f32[16,256], index: 3, kind: output, shape index: {0}]   ;;  %s508_s4 = inlined_call_operand.hbm [shape: f32[16,128], index: 4, kind: output, shape index: {1}]  }
   0x1   :  { %11 = vsyncpa [#allocation6], 0 }
   0x2   :  { %12 = vsyncpa [#allocation4], 0 }
   0x3   :  { %13 = vsyncpa [#allocation9], 0  ;;  %s448_s15 = smov [#allocation2]  }
   0x4   :  { %s19_s16 = sshll.u32 %s448_s15, 4  ;;  %s20_s16 = int_to_ptr.vmem [resolvable:$true] %s19_s16 }
   0x5   :  { %s368_s17 = scalar_lea.vmem %s20_s16, 512  ;;  %p373_p1 = scmp.lt.s32.totalorder %s20_s16, %s20_s16 }
   0x6   :  { %p369_p0 = scmp.ne.s32.totalorder %s20_s16, %s368_s17  ;;  %p374_p2 = scmp.lt.s32.totalorder %s368_s17, %s368_s17 }
   0x8   :  { %p375_p3 = por %p374_p2, %p373_p1 }
   0xa   :  { %p376_p4 = pnand %p375_p3, %p369_p0 }
   0xc   :  { %379 = shalt.err (!%p376_p4)
}
   0xd   :  { %s449_s18 = smov 256   ;;  %s450_s19 = smov 16  }
   0xe   :  { %25 = dma.hbm_to_vmem [thread:$0]  %s504_s0, 512, %s20_s16, [#allocation3], %s449_s18, %s449_s18, %s450_s19  }
   0xf   :  { %s451_s22 = smov [#allocation5]  }
  0x10   :  { %s31_s23 = sshll.u32 %s451_s22, 4  ;;  %s32_s23 = int_to_ptr.vmem [resolvable:$true] %s31_s23 }
  0x11   :  { %s388_s24 = scalar_lea.vmem %s32_s23, 2048  ;;  %p393_p6 = scmp.lt.s32.totalorder %s32_s23, %s32_s23 }
  0x12   :  { %p389_p5 = scmp.ne.s32.totalorder %s32_s23, %s388_s24  ;;  %p394_p7 = scmp.lt.s32.totalorder %s388_s24, %s388_s24 }
  0x14   :  { %p395_p8 = por %p394_p7, %p393_p6 }
  0x16   :  { %p396_p9 = pnand %p395_p8, %p389_p5 }
  0x18   :  { %399 = shalt.err (!%p396_p9)
}
  0x19   :  { %s452_s25 = smov 64   ;;  %s453_s26 = smov 4  }
  0x1a   :  { %37 = dma.hbm_to_vmem [thread:$0]  %s505_s1, 2048, %s32_s23, [#allocation6], %s452_s25, %s452_s25, %s453_s26  }
  0x1b   :  { %440 = dma.done.wait [#allocation3], 512  }
  0x1c   :  { %441 = vsyncadd [#allocation3], 4294966784 }
  0x1d   :  { %442 = dma.done.wait [#allocation6], 2048  }
  0x1e   :  { %443 = vsyncadd [#allocation6], 4294965248  ;;  %v47_v0 = vld [vmem:[#allocation2] sm:$0xff]  ;;  %v48_v1 = vld [vmem:[#allocation2 + $0x8] sm:$0xff]  ;;  %s454_s0 = smov [#allocation7]  }
  0x1f   :  { %v49_v2 = vld [vmem:[#allocation2 + $0x10] sm:$0xff]  ;;  %v51_v3 = vmul.f32 %v47_v0, %v47_v0  ;;  %v52_v4 = vmul.f32 %v48_v1, %v48_v1  ;;  %v50_v5 = vld [vmem:[#allocation2 + $0x18] sm:$0xff]  ;;  %v344_v14 = vld [vmem:[#allocation5 + $0x68] sm:$0xff]   ;;  %s262_s1 = sshll.u32 %s454_s0, 4  ;;  %s263_s1 = int_to_ptr.vmem [resolvable:$true] %s262_s1 }
  0x20   :  { %v53_v6 = vmul.f32 %v49_v2, %v49_v2  ;;  %v54_v7 = vmul.f32 %v50_v5, %v50_v5  ;;  %v340_v8 = vld [vmem:[#allocation5 + $0x78] sm:$0xff]   ;;  %v342_v11 = vld [vmem:[#allocation5 + $0x70] sm:$0xff]   ;;  %v345_v15 = vld [vmem:[#allocation5 + $0x28] sm:$0xff]   ;;  %s400_s29 = scalar_lea.vmem %s263_s1, 512  ;;  %p405_p11 = scmp.lt.s32.totalorder %s263_s1, %s263_s1 }
  0x21   :  { %v55_v9 = vadd.f32 %v52_v4, %v51_v3  ;;  %v341_v10 = vld [vmem:[#allocation5 + $0x38] sm:$0xff]   ;;  %308 = vmatprep.subr.bf16.mxu0 %v340_v8  ;;  %v343_v13 = vld [vmem:[#allocation5 + $0x30] sm:$0xff]   ;;  %v346_v16 = vld [vmem:[#allocation5 + $0x60] sm:$0xff]   ;;  %p401_p10 = scmp.ne.s32.totalorder %s263_s1, %s400_s29  ;;  %p406_p12 = scmp.lt.s32.totalorder %s400_s29, %s400_s29 }
  0x22   :  { %v58_v12 = vadd.f32 %v54_v7, %v53_v6  ;;  %309 = vmatpush3.bf16.msra.mxu0 %v341_v10  ;;  %v347_v17 = vld [vmem:[#allocation5 + $0x20] sm:$0xff]   ;;  %v348_v18 = vld [vmem:[#allocation5 + $0x58] sm:$0xff]   ;;  %v350_v20 = vld [vmem:[#allocation5 + $0x50] sm:$0xff]  }
  0x23   :  { %56 = vadd.xlane.f32.xlu0 %v55_v9  ;;  %310 = vmatprep.subr.bf16.mxu0 %v342_v11  ;;  %v349_v19 = vld [vmem:[#allocation5 + $0x18] sm:$0xff]   ;;  %v351_v21 = vld [vmem:[#allocation5 + $0x10] sm:$0xff]   ;;  %v352_v22 = vld [vmem:[#allocation5 + $0x48] sm:$0xff]   ;;  %p407_p13 = por %p406_p12, %p405_p11 }
  0x24   :  { %v353_v23 = vld [vmem:[#allocation5 + $0x8] sm:$0xff]   ;;  %v354_v24 = vld [vmem:[#allocation5 + $0x40] sm:$0xff]  }
  0x25   :  { %v355_v25 = vld [vmem:[#allocation5] sm:$0xff]   ;;  %p408_p0 = pnand %p407_p13, %p401_p10 }
  0x26   :  { %311 = vmatpush3.bf16.msra.mxu0 %v343_v13 }
  0x27   :  { %59 = vadd.xlane.f32.xlu0 %v58_v12  ;;  %312 = vmatprep.subr.bf16.mxu0 %v344_v14 }
  0x2a   :  { %313 = vmatpush3.bf16.msra.mxu0 %v345_v15 }
  0x2b   :  { %314 = vmatprep.subr.bf16.mxu0 %v346_v16 }
  0x2e   :  { %315 = vmatpush3.bf16.msra.mxu0 %v347_v17 }
  0x2f   :  { %316 = vmatprep.subr.bf16.mxu0 %v348_v18 }
  0x32   :  { %317 = vmatpush3.bf16.msra.mxu0 %v349_v19 }
  0x33   :  { %318 = vmatprep.subr.bf16.mxu0 %v350_v20 }
  0x36   :  { %319 = vmatpush3.bf16.msra.mxu0 %v351_v21 }
  0x37   :  { %320 = vmatprep.subr.bf16.mxu0 %v352_v22 }
  0x3a   :  { %321 = vmatpush3.bf16.msra.mxu0 %v353_v23 }
  0x3b   :  { %322 = vmatprep.subr.bf16.mxu0 %v354_v24 }
  0x3e   :  { %323 = vmatpush3.bf16.msra.mxu0 %v355_v25 }
  0xac   :  { %v57_v26 = vpop.xlane.xlu0 %56 }
  0xad   :  { %v61_v27 = vadd.f32 1e-12, %v57_v26 }
  0xaf   :  { %356 = vrsqrt.f32 %v61_v27 }
  0xb0   :  { %v60_v28 = vpop.xlane.xlu0 %59 }
  0xb1   :  { %v62_v29 = vadd.f32 1e-12, %v60_v28 }
  0xb3   :  { %358 = vrsqrt.f32 %v62_v29 }
  0xbc   :  { %v357_v30 = vpop.eup %356 }
  0xbd   :  { %v66_v31 = vmul.f32 %v357_v30, %v48_v1  ;;  %v65_v32 = vmul.f32 %v357_v30, %v47_v0 }
  0xbf   :  { %70 = vst [vmem:[#allocation7 + $0x8] sm:$0xff] %v66_v31  ;;  %69 = vst [vmem:[#allocation7] sm:$0xff] %v65_v32  ;;  %v74_v36 = vmax.f32 %v66_v31, 0.0  ;;  %v73_v38 = vmax.f32 %v65_v32, 0.0 }
  0xc0   :  { %v359_v33 = vpop.eup %358 }
  0xc1   :  { %v68_v34 = vmul.f32 %v359_v33, %v50_v5  ;;  %v67_v35 = vmul.f32 %v359_v33, %v49_v2 }
  0xc3   :  { %72 = vst [vmem:[#allocation7 + $0x18] sm:$0xff] %v68_v34  ;;  %v76_v37 = vmax.f32 %v68_v34, 0.0  ;;  %v75_v39 = vmax.f32 %v67_v35, 0.0  ;;  %71 = vst [vmem:[#allocation7 + $0x10] sm:$0xff] %v67_v35 }
  0xc5   :  { %v78_v40 = vpack.c.bf16 %v76_v37, %v74_v36  ;;  %v77_v41 = vpack.c.bf16 %v75_v39, %v73_v38 }
  0xc7   :  { %246 = vmatprep.mubr.bf16.mxu0 %v78_v40 }
  0xc8   :  { %247 = vmatmul.mubr.bf16.vlgmr.msra.gmra.mxu0 %v77_v41 }
  0xc9   :  { %411 = shalt.err (!%p408_p0)
}
  0xca   :  { %268 = dma.vmem_to_hbm [thread:$0]  %s263_s1, 512, %s507_s3, [#allocation4], %s449_s18, %s449_s18, %s450_s19  }
  0xcb   :  { %v291_v43 = vld [vmem:[%s506_s2] ss:$0 sm:$0xff]  ;;  %s455_s8 = smov [#allocation8]  }
  0xcc   :  { %s274_s9 = sshll.u32 %s455_s8, 4  ;;  %s275_s9 = int_to_ptr.vmem [resolvable:$true] %s274_s9 }
  0xcd   :  { %s420_s10 = scalar_lea.vmem %s275_s9, 256  ;;  %p425_p2 = scmp.lt.s32.totalorder %s275_s9, %s275_s9 }
  0xce   :  { %p421_p1 = scmp.ne.s32.totalorder %s275_s9, %s420_s10  ;;  %p426_p3 = scmp.lt.s32.totalorder %s420_s10, %s420_s10 }
  0xd0   :  { %p427_p4 = por %p426_p3, %p425_p2 }
  0xd2   :  { %p428_p5 = pnand %p427_p4, %p421_p1 }
 0x188   :  { %v324_v42 = vpop.f32.mrf.mxu0 }
 0x18a   :  { %v325_v44 = vpop.f32.mrf.mxu0 }
 0x18b   :  { %v326_v45 = vadd.f32 %v325_v44, %v324_v42 }
 0x18c   :  { %v327_v46 = vpop.f32.mrf.mxu0 }
 0x18d   :  { %v249_v47 = vadd.f32 %v326_v45, %v291_v43 }
 0x18e   :  { %v328_v48 = vpop.f32.mrf.mxu0 }
 0x18f   :  { %255 = vst [vmem:[#allocation8] sm:$0xff] %v249_v47  ;;  %v329_v49 = vadd.f32 %v328_v48, %v327_v46 }
 0x191   :  { %v252_v50 = vadd.f32 %v329_v49, %v291_v43 }
 0x193   :  { %256 = vst [vmem:[#allocation8 + $0x8] sm:$0xff] %v252_v50 }
 0x194   :  { %431 = shalt.err (!%p428_p5)
}
 0x195   :  { %s456_s2 = smov 128   ;;  %s457_s3 = smov 8  }
 0x196   :  { %280 = dma.vmem_to_hbm [thread:$0]  %s275_s9, 256, %s508_s4, [#allocation9], %s456_s2, %s456_s2, %s457_s3  }
 0x197   :  { %444 = dma.done.wait [#allocation4], 512  }
 0x198   :  { %445 = vsyncadd [#allocation4], 4294966784 }
 0x199   :  { %446 = dma.done.wait [#allocation9], 256  }
 0x19a   :  { %447 = vsyncadd [#allocation9], 4294967040 }
 0x19b   :  { %287 = vsyncpa [#allocation3], 1 }
 0x19c   :  { %288 = vsyncpa [#allocation6], 1 }
 0x19d   :  { %289 = vsyncpa [#allocation4], 1 }
 0x19e   :  { %290 = vsyncpa [#allocation9], 1 }

</bundles_post_ra>
